<compile_context>
chip_gen: v5e
topology: v5e:2x2
jax: 0.10.0
libtpu: 0.0.40
codegen_flags: <defaults>
</compile_context>

<pallas_src>
import functools

import jax
import jax.numpy as jnp
from jax import lax
from jax.experimental import pallas as pl
from jax.experimental.pallas import tpu as pltpu


# ----------------------------- Pallas kernels --------------------------------
def _conv_bn_relu_kernel(p_ref, w_ref, b_ref, y_ref, psum_ref, pmax_ref):
    """y = relu(W_folded @ patches + b_folded) with bf16 operands / f32 acc,
    plus per-tile PARTIAL sum/max over the lane (spatial) axis. The partials
    make both grid axes independent ('parallel') so v7x megacore can shard
    them; the tiny cross-tile reduce happens in JAX."""
    y = jnp.dot(w_ref[...], p_ref[...], preferred_element_type=jnp.float32)
    y = jnp.maximum(y + b_ref[...], 0.0)                    # (C_out, tw) f32
    y_ref[...] = y
    psum_ref[...] = jnp.sum(y, axis=1, keepdims=True)       # (C_out, 1)
    pmax_ref[...] = jnp.max(y, axis=1, keepdims=True)       # (C_out, 1)


def _stat_map_kernel(y_ref, ca_ref, savg_ref, smax_ref):
    """Channel gating on the fly (y2 never written to HBM) and per-pixel
    channel mean/max stat maps for the spatial-attention conv."""
    y2 = ca_ref[...] * y_ref[...]                           # (C_out, tw)
    savg_ref[...] = jnp.mean(y2, axis=0, keepdims=True)     # (1, tw)
    smax_ref[...] = jnp.max(y2, axis=0, keepdims=True)      # (1, tw)


def _sa_residual_kernel(*refs, downsample):
    """out = sigmoid(sa_logits) * (ca * y) + residual.  y2 is recomputed from
    y and ca (one VPU multiply) instead of a full HBM round-trip."""
    if downsample:
        y_ref, ca_ref, sal_ref, x_ref, wres_ref, bres_ref, o_ref = refs
    else:
        y_ref, ca_ref, sal_ref, x_ref, o_ref = refs
    sa = jax.nn.sigmoid(sal_ref[...])                       # (1, tw)
    y2 = ca_ref[...] * y_ref[...]                           # (C_out, tw)
    if downsample:
        res = jnp.dot(wres_ref[...], x_ref[...],
                      preferred_element_type=jnp.float32) + bres_ref[...]
    else:
        res = x_ref[...]                                    # c_in == c_out here
    o_ref[...] = sa * y2 + res


# ------------------------------ JAX glue --------------------------------------
def _pick_lane_tile(hw, n_batch, kk, c_out, budget_bytes=12 * 1024 * 1024):
    """Largest lane tile (multiple of 128) dividing hw whose double-buffered
    kernel-A blocks (bf16 patches + f32 y) fit a conservative VMEM budget
    (v7x: 64 MiB physical / 32 MiB scoped; v5e: 16 MiB scoped default),
    preferring >= 4 total grid steps so v7x's 2 TensorCores both get work."""
    if hw % 128 != 0:
        return hw                                   # single full-extent block
    cands = [c for c in (2048, 1024, 512, 256, 128) if hw % c == 0]

    def fits(tw):
        per_step = kk * tw * 2 + c_out * tw * 4     # bf16 patch + f32 y blocks
        return 2 * per_step <= budget_bytes         # double-buffered

    fitting = [c for c in cands if fits(c)] or [cands[-1]]
    for c in fitting:                               # largest first
        if (hw // c) * n_batch >= 4:
            return c
    return fitting[0]


def _im2col_nkm(x, k, stride, padding):
    """x: (N, C, H, W) -> (N, C*k*k, H_out*W_out); K ordered (c, ki, kj) to
    match torch Conv2d weight.reshape(C_out, C_in*k*k). No transposes."""
    n, c, h, w = x.shape
    h_out = (h + 2 * padding - k) // stride + 1
    w_out = (w + 2 * padding - k) // stride + 1
    xp = jnp.pad(x, ((0, 0), (0, 0), (padding, padding), (padding, padding)))
    taps = []
    for ki in range(k):
        for kj in range(k):
            taps.append(xp[:, :, ki:ki + stride * h_out:stride,
                           kj:kj + stride * w_out:stride])
    p = jnp.stack(taps, axis=2)                     # (N, C, k*k, H_out, W_out)
    return p.reshape(n, c * k * k, h_out * w_out), (h_out, w_out)


def _fold_bn(gamma, beta, mean, var, eps):
    scale = gamma / jnp.sqrt(var + eps)
    return scale, beta - mean * scale


@functools.partial(jax.jit, static_argnames=("k", "stride", "padding", "sa_k", "eps"))
def cbam_block_forward(x, params, *, k, stride, padding, sa_k=7, eps=1e-5):
    n, c_in, h, w = x.shape
    c_out = params["w_conv"].shape[0]
    downsample = c_in != c_out
    if not downsample:
        assert c_in == c_out  # identity residual requires matching channels

    # --- main conv: im2col + BN folding, bf16 MXU operands --------------------
    patches, (h_out, w_out) = _im2col_nkm(x, k, stride, padding)
    assert (h_out, w_out) == (h, w), "residual add requires matching spatial dims"
    hw = h_out * w_out
    kk = c_in * k * k

    scale1, shift1 = _fold_bn(params["bn1_gamma"], params["bn1_beta"],
                              params["bn1_mean"], params["bn1_var"], eps)
    w_main = (params["w_conv"].reshape(c_out, kk) * scale1[:, None]).astype(jnp.bfloat16)
    b_main = (params["b_conv"] * scale1 + shift1).reshape(c_out, 1)
    patches = patches.astype(jnp.bfloat16)

    tw = _pick_lane_tile(hw, n, kk, c_out)
    t_steps = hw // tw
    grid = (n, t_steps)

    # --- kernel A: conv + BN + ReLU + per-tile pooling partials ---------------
    y, psum, pmax = pl.pallas_call(
        _conv_bn_relu_kernel,
        out_shape=(jax.ShapeDtypeStruct((n, c_out, hw), jnp.float32),
                   jax.ShapeDtypeStruct((n, t_steps, c_out, 1), jnp.float32),
                   jax.ShapeDtypeStruct((n, t_steps, c_out, 1), jnp.float32)),
        grid_spec=pltpu.PrefetchScalarGridSpec(
            num_scalar_prefetch=0,
            grid=grid,
            in_specs=[
                pl.BlockSpec((None, kk, tw), lambda i, t: (i, 0, t)),
                pl.BlockSpec((c_out, kk), lambda i, t: (0, 0)),
                pl.BlockSpec((c_out, 1), lambda i, t: (0, 0)),
            ],
            out_specs=(
                pl.BlockSpec((None, c_out, tw), lambda i, t: (i, 0, t)),
                pl.BlockSpec((None, None, c_out, 1), lambda i, t: (i, t, 0, 0)),
                pl.BlockSpec((None, None, c_out, 1), lambda i, t: (i, t, 0, 0)),
            ),
        ),
        compiler_params=pltpu.CompilerParams(
            dimension_semantics=("parallel", "parallel"),
            vmem_limit_bytes=32 * 1024 * 1024),
        cost_estimate=pl.CostEstimate(
            flops=2 * n * hw * kk * c_out,
            transcendentals=0,
            bytes_accessed=patches.size * 2 + w_main.size * 2
                           + n * c_out * (hw + 2 * t_steps) * 4),
    )(patches, w_main, b_main)

    # --- channel-attention MLP: once per (N, C_out) in plain JAX --------------
    avg = jnp.sum(psum[..., 0], axis=1) / float(hw)         # (n, c_out)
    mx = jnp.max(pmax[..., 0], axis=1)                      # (n, c_out)
    w1 = params["ca_w1"].reshape(c_out, c_out)
    w2 = params["ca_w2"].reshape(c_out, c_out)

    def fc(v):
        hdn = jnp.maximum(jnp.dot(v, w1.T, precision=lax.Precision.HIGHEST), 0.0)
        return jnp.dot(hdn, w2.T, precision=lax.Precision.HIGHEST)

    ca = jax.nn.sigmoid(fc(avg) + fc(mx)).reshape(n, c_out, 1)

    # --- kernel B: channel gating on the fly + spatial-stat maps --------------
    s_avg, s_max = pl.pallas_call(
        _stat_map_kernel,
        out_shape=(jax.ShapeDtypeStruct((n, 1, hw), jnp.float32),
                   jax.ShapeDtypeStruct((n, 1, hw), jnp.float32)),
        grid_spec=pltpu.PrefetchScalarGridSpec(
            num_scalar_prefetch=0,
            grid=grid,
            in_specs=[
                pl.BlockSpec((None, c_out, tw), lambda i, t: (i, 0, t)),
                pl.BlockSpec((None, c_out, 1), lambda i, t: (i, 0, 0)),
            ],
            out_specs=(
                pl.BlockSpec((None, 1, tw), lambda i, t: (i, 0, t)),
                pl.BlockSpec((None, 1, tw), lambda i, t: (i, 0, t)),
            ),
        ),
        compiler_params=pltpu.CompilerParams(
            dimension_semantics=("parallel", "parallel")),
    )(y, ca)

    # --- 7x7 spatial-attention conv on the 2-channel stat map (tiny) ----------
    # Done with lax.conv in the wrapper per the perf review; avoids the 49x
    # im2col DMA blowup into kernel C.
    s2 = jnp.concatenate([s_avg, s_max], axis=1).reshape(n, 2, h_out, w_out)
    dn = lax.conv_dimension_numbers(s2.shape, params["sa_w"].shape,
                                    ("NCHW", "OIHW", "NCHW"))
    sa_logits = lax.conv_general_dilated(
        s2, params["sa_w"], window_strides=(1, 1),
        padding=[(sa_k // 2, sa_k // 2)] * 2,
        dimension_numbers=dn, precision=lax.Precision.HIGHEST,
    ).reshape(n, 1, hw)

    x_cm = x.reshape(n, c_in, h * w)

    # --- kernel C: sigmoid + gating + residual add -----------------------------
    in_specs = [
        pl.BlockSpec((None, c_out, tw), lambda i, t: (i, 0, t)),
        pl.BlockSpec((None, c_out, 1), lambda i, t: (i, 0, 0)),
        pl.BlockSpec((None, 1, tw), lambda i, t: (i, 0, t)),
        pl.BlockSpec((None, c_in, tw), lambda i, t: (i, 0, t)),
    ]
    args = [y, ca, sa_logits, x_cm]
    if downsample:
        scale2, shift2 = _fold_bn(params["bn2_gamma"], params["bn2_beta"],
                                  params["bn2_mean"], params["bn2_var"], eps)
        w_res = params["w_res"].reshape(c_out, c_in) * scale2[:, None]
        b_res = shift2.reshape(c_out, 1)
        in_specs += [pl.BlockSpec((c_out, c_in), lambda i, t: (0, 0)),
                     pl.BlockSpec((c_out, 1), lambda i, t: (0, 0))]
        args += [w_res, b_res]

    out = pl.pallas_call(
        functools.partial(_sa_residual_kernel, downsample=downsample),
        out_shape=jax.ShapeDtypeStruct((n, c_out, hw), jnp.float32),
        grid_spec=pltpu.PrefetchScalarGridSpec(
            num_scalar_prefetch=0,
            grid=grid,
            in_specs=in_specs,
            out_specs=pl.BlockSpec((None, c_out, tw), lambda i, t: (i, 0, t)),
        ),
        compiler_params=pltpu.CompilerParams(
            dimension_semantics=("parallel", "parallel")),
    )(*args)

    # (N, C_out, H*W) -> NCHW is a free reshape (no transpose pass).
    return out.reshape(n, c_out, h_out, w_out)


# ------------------------------- reference ------------------------------------
def _bn_eval(x, gamma, beta, mean, var, eps):
    scale = gamma / jnp.sqrt(var + eps)
    return x * scale[None, :, None, None] + (beta - mean * scale)[None, :, None, None]


def _conv2d_nchw(x, w, stride, padding):
    dn = lax.conv_dimension_numbers(x.shape, w.shape, ("NCHW", "OIHW", "NCHW"))
    return lax.conv_general_dilated(
        x, w, window_strides=(stride, stride),
        padding=[(padding, padding), (padding, padding)],
        dimension_numbers=dn, precision=lax.Precision.HIGHEST)


def _reference(x, params, *, stride, padding, eps=1e-5):
    c_in = x.shape[1]
    c_out = params["w_conv"].shape[0]
    y = _conv2d_nchw(x, params["w_conv"], stride, padding)
    y = y + params["b_conv"][None, :, None, None]
    y = _bn_eval(y, params["bn1_gamma"], params["bn1_beta"],
                 params["bn1_mean"], params["bn1_var"], eps)
    y = jnp.maximum(y, 0.0)

    # channel attention
    avg = jnp.mean(y, axis=(2, 3))
    mx = jnp.max(y, axis=(2, 3))
    w1 = params["ca_w1"].reshape(c_out, c_out)
    w2 = params["ca_w2"].reshape(c_out, c_out)

    def fc(v):
        h = jnp.maximum(jnp.dot(v, w1.T, precision=lax.Precision.HIGHEST), 0.0)
        return jnp.dot(h, w2.T, precision=lax.Precision.HIGHEST)

    ca = jax.nn.sigmoid(fc(avg) + fc(mx))[:, :, None, None]
    y2 = ca * y

    # spatial attention
    s = jnp.concatenate([jnp.mean(y2, axis=1, keepdims=True),
                         jnp.max(y2, axis=1, keepdims=True)], axis=1)
    sa = jax.nn.sigmoid(_conv2d_nchw(s, params["sa_w"], 1,
                                     params["sa_w"].shape[-1] // 2))
    y3 = sa * y2

    if c_in != c_out:
        r = _conv2d_nchw(x, params["w_res"], 1, 0)
        r = _bn_eval(r, params["bn2_gamma"], params["bn2_beta"],
                     params["bn2_mean"], params["bn2_var"], eps)
    else:
        r = x
    return y3 + r


# --------------------------------- main ----------------------------------------
def _make_params(key, c_in, c_out, k):
    ks = jax.random.split(key, 16)
    fan_in = c_in * k * k
    bnd = 1.0 / (fan_in ** 0.5)
    return {
        "w_conv": jax.random.uniform(ks[1], (c_out, c_in, k, k), jnp.float32, -bnd, bnd),
        "b_conv": jax.random.uniform(ks[2], (c_out,), jnp.float32, -bnd, bnd),
        "bn1_gamma": jax.random.uniform(ks[3], (c_out,), jnp.float32, 0.5, 1.5),
        "bn1_beta": jax.random.normal(ks[4], (c_out,), jnp.float32) * 0.1,
        "bn1_mean": jax.random.normal(ks[5], (c_out,), jnp.float32) * 0.1,
        "bn1_var": jax.random.uniform(ks[6], (c_out,), jnp.float32, 0.5, 1.5),
        "ca_w1": jax.random.uniform(ks[7], (c_out, c_out, 1, 1), jnp.float32, -0.35, 0.35),
        "ca_w2": jax.random.uniform(ks[8], (c_out, c_out, 1, 1), jnp.float32, -0.35, 0.35),
        "sa_w": jax.random.uniform(ks[9], (1, 2, 7, 7), jnp.float32, -0.1, 0.1),
        "w_res": jax.random.uniform(ks[10], (c_out, c_in, 1, 1), jnp.float32, -0.5, 0.5),
        "bn2_gamma": jax.random.uniform(ks[11], (c_out,), jnp.float32, 0.5, 1.5),
        "bn2_beta": jax.random.normal(ks[12], (c_out,), jnp.float32) * 0.1,
        "bn2_mean": jax.random.normal(ks[13], (c_out,), jnp.float32) * 0.1,
        "bn2_var": jax.random.uniform(ks[14], (c_out,), jnp.float32, 0.5, 1.5),
    }


if __name__ == "__main__":
    N, H, W, k, stride, padding = 2, 16, 16, 3, 1, 1
    key = jax.random.PRNGKey(0)
    k_ds, k_id, k_x1, k_x2 = jax.random.split(key, 4)

    # bf16 MXU operands (f32 accumulate) => looser tolerance than pure-f32,
    # appropriate for inference.
    RTOL = ATOL = 2e-2

    # Case 1: downsample path (c_in != c_out -> 1x1 conv + BN residual).
    C_in, C_out = 4, 8
    x = jax.random.normal(k_x1, (N, C_in, H, W), dtype=jnp.float32)
    params = _make_params(k_ds, C_in, C_out, k)
    out = cbam_block_forward(x, params, k=k, stride=stride, padding=padding)
    out = jax.block_until_ready(out)
    ref = _reference(x, params, stride=stride, padding=padding)
    assert out.shape == (N, C_out, H, W), out.shape
    err1 = float(jnp.max(jnp.abs(out - ref)))
    assert jnp.allclose(out, ref, rtol=RTOL, atol=ATOL), err1

    # Case 2: identity-residual path (c_in == c_out).
    C_in2 = C_out2 = 8
    x2 = jax.random.normal(k_x2, (N, C_in2, H, W), dtype=jnp.float32)
    params2 = _make_params(k_id, C_in2, C_out2, k)
    out2 = cbam_block_forward(x2, params2, k=k, stride=stride, padding=padding)
    out2 = jax.block_until_ready(out2)
    ref2 = _reference(x2, params2, stride=stride, padding=padding)
    assert out2.shape == (N, C_out2, H, W), out2.shape
    err2 = float(jnp.max(jnp.abs(out2 - ref2)))
    assert jnp.allclose(out2, ref2, rtol=RTOL, atol=ATOL), err2

    print("KERNEL_OK")
</pallas_src>

<mosaic_0001>
module attributes {stable_mosaic.version = 11 : i64} {
  func.func @_conv_bn_relu_kernel(%arg0: i32, %arg1: i32, %arg2: memref<1x36x128xbf16, #tpu.memory_space<vmem>>, %arg3: memref<8x36xbf16, #tpu.memory_space<vmem>>, %arg4: memref<8x1xf32, #tpu.memory_space<vmem>>, %arg5: memref<1x8x128xf32, #tpu.memory_space<vmem>>, %arg6: memref<1x1x8x1xf32, #tpu.memory_space<vmem>>, %arg7: memref<1x1x8x1xf32, #tpu.memory_space<vmem>>) attributes {dimension_semantics = [#tpu.dimension_semantics<parallel>, #tpu.dimension_semantics<parallel>], iteration_bounds = array<i64: 2, 2>, scalar_prefetch = 0 : i64, scratch_operands = 0 : i64, tpu.core_type = #tpu.core_type<tc>, window_params = [{transform_indices = @transform_0, window_bounds = array<i64: 1, 36, 128>}, {pipeline_mode = #tpu.pipeline_mode<synchronous>, transform_indices = @transform_1, window_bounds = array<i64: 8, 36>}, {pipeline_mode = #tpu.pipeline_mode<synchronous>, transform_indices = @transform_2, window_bounds = array<i64: 8, 1>}, {transform_indices = @transform_3, window_bounds = array<i64: 1, 8, 128>}, {transform_indices = @transform_4, window_bounds = array<i64: 1, 1, 8, 1>}, {transform_indices = @transform_5, window_bounds = array<i64: 1, 1, 8, 1>}]} {
    %c0 = arith.constant 0 : index
    %c0_0 = arith.constant 0 : index
    %0 = vector.load %arg3[%c0, %c0_0] : memref<8x36xbf16, #tpu.memory_space<vmem>>, vector<8x36xbf16>
    %c0_1 = arith.constant 0 : index
    %c0_2 = arith.constant 0 : index
    %c0_3 = arith.constant 0 : index
    %1 = vector.load %arg2[%c0_1, %c0_2, %c0_3] : memref<1x36x128xbf16, #tpu.memory_space<vmem>>, vector<1x36x128xbf16>
    %2 = vector.shape_cast %1 : vector<1x36x128xbf16> to vector<36x128xbf16>
    %cst = arith.constant dense<0.000000e+00> : vector<8x128xf32>
    %3 = tpu.matmul %0, %2, %cst {dimension_numbers = #tpu.dot_dimension_numbers<[1], [0], [0], [1], [0, 0, 1, 1], [], []>} : vector<8x36xbf16>, vector<36x128xbf16>, vector<8x128xf32> -> vector<8x128xf32>
    %c0_4 = arith.constant 0 : index
    %c0_5 = arith.constant 0 : index
    %4 = vector.load %arg4[%c0_4, %c0_5] : memref<8x1xf32, #tpu.memory_space<vmem>>, vector<8x1xf32>
    %5 = vector.broadcast %4 : vector<8x1xf32> to vector<8x128xf32>
    %6 = arith.addf %3, %5 : vector<8x128xf32>
    %cst_6 = arith.constant 0.000000e+00 : f32
    %7 = vector.broadcast %cst_6 : f32 to vector<8x128xf32>
    %8 = arith.maximumf %6, %7 : vector<8x128xf32>
    %c0_7 = arith.constant 0 : index
    %c0_8 = arith.constant 0 : index
    %c0_9 = arith.constant 0 : index
    %9 = vector.load %arg5[%c0_7, %c0_8, %c0_9] : memref<1x8x128xf32, #tpu.memory_space<vmem>>, vector<1x8x128xf32>
    %10 = vector.shape_cast %9 : vector<1x8x128xf32> to vector<8x128xf32>
    %11 = vector.shape_cast %8 : vector<8x128xf32> to vector<1x8x128xf32>
    tpu.vector_store %arg5[%c0_7, %c0_8, %c0_9], %11 {strides = array<i32>} : memref<1x8x128xf32, #tpu.memory_space<vmem>>, vector<1x8x128xf32>,
    %cst_10 = arith.constant dense<0.000000e+00> : vector<8xf32>
    %12 = vector.multi_reduction <add>, %8, %cst_10 [1] : vector<8x128xf32> to vector<8xf32>
    %13 = vector.shape_cast %12 : vector<8xf32> to vector<8x1xf32>
    %c0_11 = arith.constant 0 : index
    %c0_12 = arith.constant 0 : index
    %c0_13 = arith.constant 0 : index
    %c0_14 = arith.constant 0 : index
    %14 = vector.load %arg6[%c0_11, %c0_12, %c0_13, %c0_14] : memref<1x1x8x1xf32, #tpu.memory_space<vmem>>, vector<1x1x8x1xf32>
    %15 = vector.shape_cast %14 : vector<1x1x8x1xf32> to vector<8x1xf32>
    %16 = vector.shape_cast %13 : vector<8x1xf32> to vector<1x1x8x1xf32>
    tpu.vector_store %arg6[%c0_11, %c0_12, %c0_13, %c0_14], %16 {strides = array<i32>} : memref<1x1x8x1xf32, #tpu.memory_space<vmem>>, vector<1x1x8x1xf32>,
    %cst_15 = arith.constant dense<0xFF800000> : vector<8xf32>
    %17 = vector.multi_reduction <maximumf>, %8, %cst_15 [1] : vector<8x128xf32> to vector<8xf32>
    %18 = vector.shape_cast %17 : vector<8xf32> to vector<8x1xf32>
    %c0_16 = arith.constant 0 : index
    %c0_17 = arith.constant 0 : index
    %c0_18 = arith.constant 0 : index
    %c0_19 = arith.constant 0 : index
    %19 = vector.load %arg7[%c0_16, %c0_17, %c0_18, %c0_19] : memref<1x1x8x1xf32, #tpu.memory_space<vmem>>, vector<1x1x8x1xf32>
    %20 = vector.shape_cast %19 : vector<1x1x8x1xf32> to vector<8x1xf32>
    %21 = vector.shape_cast %18 : vector<8x1xf32> to vector<1x1x8x1xf32>
    tpu.vector_store %arg7[%c0_16, %c0_17, %c0_18, %c0_19], %21 {strides = array<i32>} : memref<1x1x8x1xf32, #tpu.memory_space<vmem>>, vector<1x1x8x1xf32>,
    return
  }
  func.func @transform_0(%arg0: i32, %arg1: i32) -> (i32, i32, i32) {
    %c0_i32 = arith.constant 0 : i32
    %c0_i32_0 = arith.constant 0 : i32
    return %arg0, %c0_i32, %arg1 : i32, i32, i32
  }
  func.func @transform_1(%arg0: i32, %arg1: i32) -> (i32, i32) {
    %c0_i32 = arith.constant 0 : i32
    %c0_i32_0 = arith.constant 0 : i32
    %c0_i32_1 = arith.constant 0 : i32
    return %c0_i32, %c0_i32_0 : i32, i32
  }
  func.func @transform_2(%arg0: i32, %arg1: i32) -> (i32, i32) {
    %c0_i32 = arith.constant 0 : i32
    %c0_i32_0 = arith.constant 0 : i32
    %c0_i32_1 = arith.constant 0 : i32
    return %c0_i32, %c0_i32_0 : i32, i32
  }
  func.func @transform_3(%arg0: i32, %arg1: i32) -> (i32, i32, i32) {
    %c0_i32 = arith.constant 0 : i32
    %c0_i32_0 = arith.constant 0 : i32
    return %arg0, %c0_i32, %arg1 : i32, i32, i32
  }
  func.func @transform_4(%arg0: i32, %arg1: i32) -> (i32, i32, i32, i32) {
    %c0_i32 = arith.constant 0 : i32
    %c0_i32_0 = arith.constant 0 : i32
    %c0_i32_1 = arith.constant 0 : i32
    return %arg0, %arg1, %c0_i32, %c0_i32_0 : i32, i32, i32, i32
  }
  func.func @transform_5(%arg0: i32, %arg1: i32) -> (i32, i32, i32, i32) {
    %c0_i32 = arith.constant 0 : i32
    %c0_i32_0 = arith.constant 0 : i32
    %c0_i32_1 = arith.constant 0 : i32
    return %arg0, %arg1, %c0_i32, %c0_i32_0 : i32, i32, i32, i32
  }
}

module attributes {stable_mosaic.version = 11 : i64} {
  func.func @_stat_map_kernel(%arg0: i32, %arg1: i32, %arg2: memref<1x8x128xf32, #tpu.memory_space<vmem>>, %arg3: memref<1x8x1xf32, #tpu.memory_space<vmem>>, %arg4: memref<1x1x128xf32, #tpu.memory_space<vmem>>, %arg5: memref<1x1x128xf32, #tpu.memory_space<vmem>>) attributes {dimension_semantics = [#tpu.dimension_semantics<parallel>, #tpu.dimension_semantics<parallel>], iteration_bounds = array<i64: 2, 2>, scalar_prefetch = 0 : i64, scratch_operands = 0 : i64, tpu.core_type = #tpu.core_type<tc>, window_params = [{transform_indices = @transform_0, window_bounds = array<i64: 1, 8, 128>}, {transform_indices = @transform_1, window_bounds = array<i64: 1, 8, 1>}, {transform_indices = @transform_2, window_bounds = array<i64: 1, 1, 128>}, {transform_indices = @transform_3, window_bounds = array<i64: 1, 1, 128>}]} {
    %c0 = arith.constant 0 : index
    %c0_0 = arith.constant 0 : index
    %c0_1 = arith.constant 0 : index
    %0 = vector.load %arg3[%c0, %c0_0, %c0_1] : memref<1x8x1xf32, #tpu.memory_space<vmem>>, vector<1x8x1xf32>
    %1 = vector.shape_cast %0 : vector<1x8x1xf32> to vector<8x1xf32>
    %c0_2 = arith.constant 0 : index
    %c0_3 = arith.constant 0 : index
    %c0_4 = arith.constant 0 : index
    %2 = vector.load %arg2[%c0_2, %c0_3, %c0_4] : memref<1x8x128xf32, #tpu.memory_space<vmem>>, vector<1x8x128xf32>
    %3 = vector.shape_cast %2 : vector<1x8x128xf32> to vector<8x128xf32>
    %4 = vector.broadcast %1 : vector<8x1xf32> to vector<8x128xf32>
    %5 = arith.mulf %4, %3 : vector<8x128xf32>
    %cst = arith.constant dense<0.000000e+00> : vector<128xf32>
    %6 = vector.multi_reduction <add>, %5, %cst [0] : vector<8x128xf32> to vector<128xf32>
    %7 = vector.shape_cast %6 : vector<128xf32> to vector<1x128xf32>
    %cst_5 = arith.constant 8.000000e+00 : f32
    %8 = vector.broadcast %cst_5 : f32 to vector<1x128xf32>
    %9 = arith.divf %7, %8 : vector<1x128xf32>
    %c0_6 = arith.constant 0 : index
    %c0_7 = arith.constant 0 : index
    %c0_8 = arith.constant 0 : index
    %10 = vector.load %arg4[%c0_6, %c0_7, %c0_8] : memref<1x1x128xf32, #tpu.memory_space<vmem>>, vector<1x1x128xf32>
    %11 = vector.shape_cast %10 : vector<1x1x128xf32> to vector<1x128xf32>
    %12 = vector.shape_cast %9 : vector<1x128xf32> to vector<1x1x128xf32>
    tpu.vector_store %arg4[%c0_6, %c0_7, %c0_8], %12 {strides = array<i32>} : memref<1x1x128xf32, #tpu.memory_space<vmem>>, vector<1x1x128xf32>,
    %cst_9 = arith.constant dense<0xFF800000> : vector<128xf32>
    %13 = vector.multi_reduction <maximumf>, %5, %cst_9 [0] : vector<8x128xf32> to vector<128xf32>
    %14 = vector.shape_cast %13 : vector<128xf32> to vector<1x128xf32>
    %c0_10 = arith.constant 0 : index
    %c0_11 = arith.constant 0 : index
    %c0_12 = arith.constant 0 : index
    %15 = vector.load %arg5[%c0_10, %c0_11, %c0_12] : memref<1x1x128xf32, #tpu.memory_space<vmem>>, vector<1x1x128xf32>
    %16 = vector.shape_cast %15 : vector<1x1x128xf32> to vector<1x128xf32>
    %17 = vector.shape_cast %14 : vector<1x128xf32> to vector<1x1x128xf32>
    tpu.vector_store %arg5[%c0_10, %c0_11, %c0_12], %17 {strides = array<i32>} : memref<1x1x128xf32, #tpu.memory_space<vmem>>, vector<1x1x128xf32>,
    return
  }
  func.func @transform_0(%arg0: i32, %arg1: i32) -> (i32, i32, i32) {
    %c0_i32 = arith.constant 0 : i32
    %c0_i32_0 = arith.constant 0 : i32
    return %arg0, %c0_i32, %arg1 : i32, i32, i32
  }
  func.func @transform_1(%arg0: i32, %arg1: i32) -> (i32, i32, i32) {
    %c0_i32 = arith.constant 0 : i32
    %c0_i32_0 = arith.constant 0 : i32
    %c0_i32_1 = arith.constant 0 : i32
    return %arg0, %c0_i32, %c0_i32_0 : i32, i32, i32
  }
  func.func @transform_2(%arg0: i32, %arg1: i32) -> (i32, i32, i32) {
    %c0_i32 = arith.constant 0 : i32
    %c0_i32_0 = arith.constant 0 : i32
    return %arg0, %c0_i32, %arg1 : i32, i32, i32
  }
  func.func @transform_3(%arg0: i32, %arg1: i32) -> (i32, i32, i32) {
    %c0_i32 = arith.constant 0 : i32
    %c0_i32_0 = arith.constant 0 : i32
    return %arg0, %c0_i32, %arg1 : i32, i32, i32
  }
}

module attributes {stable_mosaic.version = 11 : i64} {
  func.func @_sa_residual_kernel(%arg0: i32, %arg1: i32, %arg2: memref<1x8x128xf32, #tpu.memory_space<vmem>>, %arg3: memref<1x8x1xf32, #tpu.memory_space<vmem>>, %arg4: memref<1x1x128xf32, #tpu.memory_space<vmem>>, %arg5: memref<1x4x128xf32, #tpu.memory_space<vmem>>, %arg6: memref<8x4xf32, #tpu.memory_space<vmem>>, %arg7: memref<8x1xf32, #tpu.memory_space<vmem>>, %arg8: memref<1x8x128xf32, #tpu.memory_space<vmem>>) attributes {dimension_semantics = [#tpu.dimension_semantics<parallel>, #tpu.dimension_semantics<parallel>], iteration_bounds = array<i64: 2, 2>, scalar_prefetch = 0 : i64, scratch_operands = 0 : i64, tpu.core_type = #tpu.core_type<tc>, window_params = [{transform_indices = @transform_0, window_bounds = array<i64: 1, 8, 128>}, {transform_indices = @transform_1, window_bounds = array<i64: 1, 8, 1>}, {transform_indices = @transform_2, window_bounds = array<i64: 1, 1, 128>}, {transform_indices = @transform_3, window_bounds = array<i64: 1, 4, 128>}, {pipeline_mode = #tpu.pipeline_mode<synchronous>, transform_indices = @transform_4, window_bounds = array<i64: 8, 4>}, {pipeline_mode = #tpu.pipeline_mode<synchronous>, transform_indices = @transform_5, window_bounds = array<i64: 8, 1>}, {transform_indices = @transform_6, window_bounds = array<i64: 1, 8, 128>}]} {
    %c0 = arith.constant 0 : index
    %c0_0 = arith.constant 0 : index
    %c0_1 = arith.constant 0 : index
    %0 = vector.load %arg4[%c0, %c0_0, %c0_1] : memref<1x1x128xf32, #tpu.memory_space<vmem>>, vector<1x1x128xf32>
    %1 = vector.shape_cast %0 : vector<1x1x128xf32> to vector<1x128xf32>
    %2 = arith.negf %1 : vector<1x128xf32>
    %3 = math.exp %2 : vector<1x128xf32>
    %cst = arith.constant 1.000000e+00 : f32
    %4 = vector.broadcast %cst : f32 to vector<1x128xf32>
    %5 = arith.addf %4, %3 : vector<1x128xf32>
    %6 = arith.divf %4, %5 : vector<1x128xf32>
    %c0_2 = arith.constant 0 : index
    %c0_3 = arith.constant 0 : index
    %c0_4 = arith.constant 0 : index
    %7 = vector.load %arg3[%c0_2, %c0_3, %c0_4] : memref<1x8x1xf32, #tpu.memory_space<vmem>>, vector<1x8x1xf32>
    %8 = vector.shape_cast %7 : vector<1x8x1xf32> to vector<8x1xf32>
    %c0_5 = arith.constant 0 : index
    %c0_6 = arith.constant 0 : index
    %c0_7 = arith.constant 0 : index
    %9 = vector.load %arg2[%c0_5, %c0_6, %c0_7] : memref<1x8x128xf32, #tpu.memory_space<vmem>>, vector<1x8x128xf32>
    %10 = vector.shape_cast %9 : vector<1x8x128xf32> to vector<8x128xf32>
    %11 = vector.broadcast %8 : vector<8x1xf32> to vector<8x128xf32>
    %12 = arith.mulf %11, %10 : vector<8x128xf32>
    %c0_8 = arith.constant 0 : index
    %c0_9 = arith.constant 0 : index
    %13 = vector.load %arg6[%c0_8, %c0_9] : memref<8x4xf32, #tpu.memory_space<vmem>>, vector<8x4xf32>
    %c0_10 = arith.constant 0 : index
    %c0_11 = arith.constant 0 : index
    %c0_12 = arith.constant 0 : index
    %14 = vector.load %arg5[%c0_10, %c0_11, %c0_12] : memref<1x4x128xf32, #tpu.memory_space<vmem>>, vector<1x4x128xf32>
    %15 = vector.shape_cast %14 : vector<1x4x128xf32> to vector<4x128xf32>
    %cst_13 = arith.constant dense<0.000000e+00> : vector<8x128xf32>
    %16 = tpu.matmul %13, %15, %cst_13 {dimension_numbers = #tpu.dot_dimension_numbers<[1], [0], [0], [1], [0, 0, 1, 1], [], []>} : vector<8x4xf32>, vector<4x128xf32>, vector<8x128xf32> -> vector<8x128xf32>
    %c0_14 = arith.constant 0 : index
    %c0_15 = arith.constant 0 : index
    %17 = vector.load %arg7[%c0_14, %c0_15] : memref<8x1xf32, #tpu.memory_space<vmem>>, vector<8x1xf32>
    %18 = vector.broadcast %17 : vector<8x1xf32> to vector<8x128xf32>
    %19 = arith.addf %16, %18 : vector<8x128xf32>
    %20 = vector.broadcast %6 : vector<1x128xf32> to vector<8x128xf32>
    %21 = arith.mulf %20, %12 : vector<8x128xf32>
    %22 = arith.addf %21, %19 : vector<8x128xf32>
    %c0_16 = arith.constant 0 : index
    %c0_17 = arith.constant 0 : index
    %c0_18 = arith.constant 0 : index
    %23 = vector.load %arg8[%c0_16, %c0_17, %c0_18] : memref<1x8x128xf32, #tpu.memory_space<vmem>>, vector<1x8x128xf32>
    %24 = vector.shape_cast %23 : vector<1x8x128xf32> to vector<8x128xf32>
    %25 = vector.shape_cast %22 : vector<8x128xf32> to vector<1x8x128xf32>
    tpu.vector_store %arg8[%c0_16, %c0_17, %c0_18], %25 {strides = array<i32>} : memref<1x8x128xf32, #tpu.memory_space<vmem>>, vector<1x8x128xf32>,
    return
  }
  func.func @transform_0(%arg0: i32, %arg1: i32) -> (i32, i32, i32) {
    %c0_i32 = arith.constant 0 : i32
    %c0_i32_0 = arith.constant 0 : i32
    return %arg0, %c0_i32, %arg1 : i32, i32, i32
  }
  func.func @transform_1(%arg0: i32, %arg1: i32) -> (i32, i32, i32) {
    %c0_i32 = arith.constant 0 : i32
    %c0_i32_0 = arith.constant 0 : i32
    %c0_i32_1 = arith.constant 0 : i32
    return %arg0, %c0_i32, %c0_i32_0 : i32, i32, i32
  }
  func.func @transform_2(%arg0: i32, %arg1: i32) -> (i32, i32, i32) {
    %c0_i32 = arith.constant 0 : i32
    %c0_i32_0 = arith.constant 0 : i32
    return %arg0, %c0_i32, %arg1 : i32, i32, i32
  }
  func.func @transform_3(%arg0: i32, %arg1: i32) -> (i32, i32, i32) {
    %c0_i32 = arith.constant 0 : i32
    %c0_i32_0 = arith.constant 0 : i32
    return %arg0, %c0_i32, %arg1 : i32, i32, i32
  }
  func.func @transform_4(%arg0: i32, %arg1: i32) -> (i32, i32) {
    %c0_i32 = arith.constant 0 : i32
    %c0_i32_0 = arith.constant 0 : i32
    %c0_i32_1 = arith.constant 0 : i32
    return %c0_i32, %c0_i32_0 : i32, i32
  }
  func.func @transform_5(%arg0: i32, %arg1: i32) -> (i32, i32) {
    %c0_i32 = arith.constant 0 : i32
    %c0_i32_0 = arith.constant 0 : i32
    %c0_i32_1 = arith.constant 0 : i32
    return %c0_i32, %c0_i32_0 : i32, i32
  }
  func.func @transform_6(%arg0: i32, %arg1: i32) -> (i32, i32, i32) {
    %c0_i32 = arith.constant 0 : i32
    %c0_i32_0 = arith.constant 0 : i32
    return %arg0, %c0_i32, %arg1 : i32, i32, i32
  }
}

</mosaic_0001>

<bundles_post_ra>
// kernel: cbam_block_forward.4
= control target key start
LH: loop header
LB: loop body
LE: loop exit
PB: predicated region body
PF: predicated region fallthrough
CT: control target
= control target key end

     0   :  { %s518_s12 = smov 0   ;;  %s520_s13 = smov 0   ;;  %s575_s0 = inlined_call_operand.vmem [shape: f32[2,8,256], index: 0, kind: input, shape index: {}]   ;;  %s576_s1 = inlined_call_operand.vmem [shape: f32[2,8,1], index: 1, kind: input, shape index: {}]   ;;  %s577_s2 = inlined_call_operand.vmem [shape: f32[2,1,256], index: 2, kind: output, shape index: {0}]   ;;  %s578_s3 = inlined_call_operand.vmem [shape: f32[2,1,256], index: 3, kind: output, shape index: {1}]  }
   0x1   :  { %s522_s14 = smov 0   ;;  %s524_s15 = smov 0  }
   0x2   :  { %s526_s16 = smov 0  }
   0x3 LB: > { %s23_s17 = sadd.s32 1, %s486_s14  ;;  %s26_s18 = sadd.s32 1, %s490_s15  ;;  %s494_s16 = sphi %s526_s16, %s14_s16   ;;  %s490_s15 = sphi %s524_s15, %s582_s15   ;;  %s486_s14 = sphi %s522_s14, %s581_s14   ;;  %s482_s13 = sphi %s520_s13, %s580_s13   ;;  %s478_s12 = sphi %s518_s12, %s579_s12  }
   0x4   : > { %p24_p0 = scmp.ge.s32.totalorder %s23_s17, 2  ;;  %p403_p1 = scmp.ge.s32.totalorder %s494_s16, 1 }
   0x5   : > { %p170_p2 = scmp.lt.s32.totalorder %s494_s16, 5 }
   0x6   : > { %s584_s17 = smov (%p24_p0, %s23_s17), 0  ;;  %s586_s18 = smov (!%p24_p0, %s26_s18), %s490_s15 }
   0x7   : > { %p171_p3 = pnand %p403_p1, %p170_p2  ;;  %p28_p4 = scmp.ge.s32.totalorder %s586_s18, 2 }
   0x8   : > { %p210_p5 = scmp.lt.s32.totalorder (!%p171_p3), %s482_s13, 1  ;;  %p212_p6 = scmp.lt.s32.totalorder (!%p171_p3), %s478_s12, 1 }
   0x9   : > { %s588_s18 = smov (%p28_p4, %s586_s18), 0  ;;  %174 = sbr.rel (%p171_p3) target bundleno = 150 (0x96), region = 28 }
   0xe   : > { %v496_v0 = vmov 0   ;;  %s590_s13 = smov (!%p210_p5, %s482_s13), 1  ;;  %s592_s12 = smov (!%p212_p6, %s478_s12), 1  ;;  %v497_v2 = vmov 8.0  }
   0xf   : > { %453 = vset.pattern.permute.xlu0 %v496_v0  ;;  %s406_s19 = sshll.u32 %s590_s13, 3  ;;  %s404_s23 = sshll.u32 %s590_s13, 1  ;;  %454 = vrcp.f32 %v497_v2 }
  0x10   : > { %s221_s22 = scalar_lea.vmem %s576_s1, %s406_s19  ;;  %s215_s24 = sadd.s32 %s404_s23, %s592_s12 }
  0x11   : > { %v236_v1 = vld [vmem:[%s221_s22] sm:$0xff]  ;;  %s405_s25 = sshll.u32 %s215_s24, 3  ;;  %s235_s4 = scalar_lea.vmem %s578_s3, %s215_s24 }
  0x12   : > { %240 = vperm.xlu0 %453, %v236_v1   ;;  %s217_s28 = scalar_lea.vmem %s575_s0, %s405_s25  ;;  %s228_s7 = scalar_lea.vmem %s577_s2, %s215_s24 }
  0x13   : > { %v237_v5 = vld [vmem:[%s217_s28] sm:$0xff] }
  0x15   : > { %v455_v3 = vpop.eup %454 }
  0x16   : > { %v251_v4 = vmul.f32 8.0, %v455_v3  ;;  %vm255_vm0 = vweird.f32 %v455_v3 }
  0x18   : > { %v252_v6 = vsub.f32 1.0, %v251_v4 }
  0x1a   : > { %v253_v10 = vmul.f32 %v455_v3, %v252_v6 }
  0x1c   : > { %v254_v15 = vadd.f32 %v455_v3, %v253_v10 }
  0x1e   : > { %v256_v20 = vsel %vm255_vm0, %v455_v3, %v254_v15 }
  0x84   : > { %v241_v7 = vpop.permute.xlu0 %240 }
  0x85   : > { %v243_v8 = vmul.f32 %v241_v7, %v237_v5 }
  0x87   : > { %v244_v9 = vrot.slane %v243_v8, 4 }
  0x89   : > { %v245_v11 = vadd.f32 %v244_v9, %v243_v8  ;;  %v260_v12 = vmax.f32 %v243_v8, %v244_v9 }
  0x8b   : > { %v246_v13 = vrot.slane %v245_v11, 2  ;;  %v261_v14 = vrot.slane %v260_v12, 2 }
  0x8d   : > { %v247_v16 = vadd.f32 %v246_v13, %v245_v11  ;;  %v262_v17 = vmax.f32 %v260_v12, %v261_v14 }
  0x8f   : > { %v248_v18 = vrot.slane %v247_v16, 1  ;;  %v263_v19 = vrot.slane %v262_v17, 1 }
  0x91   : > { %v249_v21 = vadd.f32 %v248_v18, %v247_v16  ;;  %v264_v22 = vmax.f32 %v262_v17, %v263_v19 }
  0x93   : > { %v257_v23 = vmul.f32 %v256_v20, %v249_v21  ;;  %265 = vst [vmem:[%s235_s4] sm:$0x1] %v264_v22 }
  0x95   : > { %258 = vst [vmem:[%s228_s7] sm:$0x1] %v257_v23 }
  0x96 PF: > { %s14_s16 = sadd.s32 1, %s494_s16   ;;  %s579_s12 = smov %s486_s14 }
  0x97   : > { %p11_p7 = scmp.ge.s32.totalorder %s14_s16, 6   ;;  %s580_s13 = smov %s490_s15 }
  0x98   : > { %s581_s14 = smov %s584_s17  ;;  %s582_s15 = smov %s588_s18 }
  0x99   :  { %13 = sbr.rel (!%p11_p7) target bundleno = 3 (0x3), region = 73 }

// kernel: cbam_block_forward.3
= control target key start
LH: loop header
LB: loop body
LE: loop exit
PB: predicated region body
PF: predicated region fallthrough
CT: control target
= control target key end

     0   :  { %s762_s18 = smov 0   ;;  %s764_s19 = smov 0   ;;  %s865_s0 = inlined_call_operand.vmem [shape: bf16[2,36,256], index: 0, kind: input, shape index: {}]   ;;  %s866_s1 = inlined_call_operand.vmem [shape: bf16[8,36], index: 1, kind: input, shape index: {}]   ;;  %s867_s2 = inlined_call_operand.vmem [shape: f32[8,1], index: 2, kind: input, shape index: {}]   ;;  %s868_s3 = inlined_call_operand.vmem [shape: f32[2,8,256], index: 3, kind: output, shape index: {0}]   ;;  %s869_s4 = inlined_call_operand.vmem [shape: f32[2,2,8,1], index: 4, kind: output, shape index: {1}]   ;;  %s870_s5 = inlined_call_operand.vmem [shape: f32[2,2,8,1], index: 5, kind: output, shape index: {2}]  }
   0x1   :  { %s766_s20 = smov 0   ;;  %s768_s21 = smov 0  }
   0x2   :  { %s770_s22 = smov 0   ;;  %s772_s23 = smov 0  }
   0x3   :  { %s774_s24 = smov 0  }
   0x4 LB: > { %s25_s25 = sadd.s32 1, %s721_s22  ;;  %s28_s26 = sadd.s32 1, %s725_s23  ;;  %s729_s24 = sphi %s774_s24, %s16_s24   ;;  %s725_s23 = sphi %s772_s23, %s876_s23   ;;  %s721_s22 = sphi %s770_s22, %s875_s22   ;;  %s717_s21 = sphi %s768_s21, %s874_s21   ;;  %s713_s20 = sphi %s766_s20, %s873_s20   ;;  %s709_s19 = sphi %s764_s19, %s872_s19   ;;  %s705_s18 = sphi %s762_s18, %s871_s18  }
   0x5   : > { %p26_p0 = scmp.ge.s32.totalorder %s25_s25, 2  ;;  %p44_p1 = scmp.ne.s32.totalorder %s709_s19, %s705_s18 }
   0x6   : > { %p45_p2 = scmp.eq.s32.totalorder %s729_s24, 0  ;;  %s37_s30 = sadd.s32 1, %s709_s19 }
   0x7   : > { %s878_s25 = smov (%p26_p0, %s25_s25), 0  ;;  %s880_s26 = smov (!%p26_p0, %s28_s26), %s725_s23 }
   0x8   : > { %p46_p3 = por %p45_p2, %p44_p1  ;;  %p30_p4 = scmp.ge.s32.totalorder %s880_s26, 2 }
   0x9   : > { %s33_s27 = ssub.s32 %s721_s22, %s878_s25  ;;  %p592_p6 = scmp.ge.s32.totalorder %s729_s24, 4 }
   0xa   : > { %s882_s26 = smov (%p30_p4, %s880_s26), 0 }
   0xb   : > { %s32_s28 = ssub.s32 %s725_s23, %s882_s26  ;;  %202 = sbr.rel (%p592_p6) target bundleno = 28 (0x1c), region = 24 }
   0xc   : > { %s34_s29 = sor.u32 %s33_s27, %s32_s28 }
   0xd   : > { %p35_p5 = scmp.eq.s32.totalorder %s34_s29, 0 }
   0xf   : > { %s813_s6 = scalar_select %p35_p5, %s709_s19, %s37_s30  }
  0x10   : > { %205 = sbr.rel (!%p46_p3) target bundleno = 28 (0x1c), region = 28  ;;  %s207_s7 = sand.u32 (%p46_p3), 1, %s709_s19  }
  0x11   : > { %s615_s8 = smul.u32 (%p46_p3), 10, %s725_s23 }
  0x12   : > { %s614_s9 = smul.u32 (%p46_p3), 20, %s207_s7 }
  0x13   : > { %s211_s10 = sadd.s32 (%p46_p3), %s721_s22, %s615_s8 }
  0x14   : > { %s593_s11 = sshll.u32 (%p46_p3), %s211_s10, 2  ;;  %s209_s15 = scalar_lea.vmem (%p46_p3), [#allocation2], %s614_s9 }
  0x15   : > { %s213_s14 = scalar_lea.vmem %s865_s0, %s593_s11 }
  0x16   : > { %v230_v0 = vld [vmem:[%s213_s14] sm:$0xf]  ;;  %v232_v1 = vld [vmem:[%s213_s14 + $0x8] sm:$0xf]  ;;  %v234_v2 = vld [vmem:[%s213_s14 + $0x10] sm:$0xf] }
  0x17   : > { %231 = vst [vmem:[%s209_s15] sm:$0xf] %v230_v0  ;;  %v236_v3 = vld [vmem:[%s213_s14 + $0x18] sm:$0xf]  ;;  %v238_v4 = vld [vmem:[%s213_s14 + $0x20] sm:$0xf] }
  0x18   : > { %233 = vst [vmem:[%s209_s15 + $0x4] sm:$0xf] %v232_v1 }
  0x19   : > { %235 = vst [vmem:[%s209_s15 + $0x8] sm:$0xf] %v234_v2 }
  0x1a   : > { %237 = vst [vmem:[%s209_s15 + $0xc] sm:$0xf] %v236_v3 }
  0x1b   : > { %239 = vst [vmem:[%s209_s15 + $0x10] sm:$0xf] %v238_v4 }
  0x1c PF: > { %p594_p7 = scmp.ge.s32.totalorder %s729_s24, 1  ;;  %p272_p8 = scmp.lt.s32.totalorder %s729_s24, 5 }
  0x1e   : > { %p273_p9 = pnand %p594_p7, %p272_p8 }
  0x1f   : > { %s279_s16 = sand.u32 (!%p273_p9), 1, %s705_s18   ;;  %p325_p10 = scmp.lt.s32.totalorder (!%p273_p9), %s717_s21, 1 }
  0x20   : > { %276 = sbr.rel (%p273_p9) target bundleno = 303 (0x12f), region = 69  ;;  %p327_p11 = scmp.lt.s32.totalorder (!%p273_p9), %s713_s20, 1 }
  0x21   : > { %s616_s17 = smul.u32 (!%p273_p9), 20, %s279_s16 }
  0x23   : > { %s281_s29 = scalar_lea.vmem (!%p273_p9), [#allocation2], %s616_s17 }
  0x25   : > { %v731_v5 = vmov 0   ;;  %v356_v6 = vld [vmem:[%s867_s2] sm:$0xff]  ;;  %vm381_vm0 = vcmask 1041408   ;;  %vm377_vm1 = vcmask 293888   ;;  %s884_s21 = smov (!%p325_p10, %s717_s21), 1  ;;  %s886_s20 = smov (!%p327_p11, %s713_s20), 1 }
  0x26   : > { %674 = vset.pattern.permute.xlu0 %v731_v5  ;;  %v355_v7 = vld [vmem:[%s281_s29 + $0x10] sm:$0x3]  ;;  %v613_v11 = vld [vmem:[%s281_s29 + $0x8] sm:$0xff]  ;;  %v612_v12 = vld [vmem:[%s281_s29] sm:$0xff]  ;;  %s595_s7 = sshll.u32 %s884_s21, 1  ;;  %vm402_vm2 = vcmask 7168  }
  0x27   : > { %359 = vperm.xlu0 %674, %v356_v6   ;;  %v371_v8 = vunpack.c.l.b16 %v355_v7  ;;  %v350_v13 = vld [vmem:[%s866_s1] sm:$0xf]  ;;  %s330_s8 = sadd.s32 %s595_s7, %s886_s20 }
  0x28   : > { %s596_s9 = sshll.u32 %s330_s8, 3 }
  0x29   : > { %v374_v9 = vpack.c.b16 %v371_v8, %v371_v8  ;;  %s332_s12 = scalar_lea.vmem %s868_s3, %s596_s9  ;;  %s348_s15 = scalar_lea.vmem %s870_s5, %s596_s9 }
  0x2a   : > { %s340_s16 = scalar_lea.vmem %s869_s4, %s596_s9 }
  0x2b   : > { %v383_v10 = vsel %vm381_vm0, %v374_v9, 0 }
  0x2c   : > { %390 = vmatpush.bf16.msra.mxu0 %v383_v10 }
  0x30   : > { %391 = vmatpush.bf16.msra.mxu0 %v613_v11 }
  0x34   : > { %392 = vmatpush.bf16.msra.mxu0 %v612_v12 }
  0x37   : > { %609 = vmatmul.msk.bf16.vlgmr.msra.gmra.mxu0 %vm377_vm1, %v350_v13 }
  0x99   : > { %v360_v14 = vpop.permute.xlu0 %359 }
  0xb4   : > { %v394_v15 = vpop.f32.mrf.mxu0 }
  0xb5   : > { %v395_v16 = vadd.f32 %v394_v15, %v360_v14 }
  0xb7   : > { %v398_v17 = vmax.f32 %v395_v16, 0.0 }
  0xb9   : > { %399 = vst [vmem:[%s332_s12] sm:$0xff] %v398_v17  ;;  %404 = vmax.xlane.f32.xlu1 %v398_v17  ;;  %400 = vadd.xlane.f32.xlu0 %v398_v17 }
  0xbc   : > { %v396_v18 = vpop.f32.mrf.mxu0 }
 0x12c   : > { %v405_v19 = vpop.xlane.xlu1 %404  ;;  %v401_v20 = vpop.xlane.xlu0 %400 }
 0x12d   : > { %406 = vst.msk [vmem:[%s348_s15] sm:$0xff] %vm402_vm2, %v405_v19 }
 0x12e   : > { %403 = vst.msk [vmem:[%s340_s16] sm:$0xff] %vm402_vm2, %v401_v20 }
 0x12f PF: > { %s16_s24 = sadd.s32 1, %s729_s24   ;;  %s871_s18 = smov %s709_s19 }
 0x130   : > { %p13_p12 = scmp.ge.s32.totalorder %s16_s24, 6   ;;  %s872_s19 = smov %s813_s6 }
 0x131   : > { %s873_s20 = smov %s721_s22  ;;  %s874_s21 = smov %s725_s23 }
 0x132   : > { %s875_s22 = smov %s878_s25  ;;  %s876_s23 = smov %s882_s26 }
 0x133   :  { %15 = sbr.rel (!%p13_p12) target bundleno = 4 (0x4), region = 132 }

// kernel: cbam_block_forward.5
= control target key start
LH: loop header
LB: loop body
LE: loop exit
PB: predicated region body
PF: predicated region fallthrough
CT: control target
= control target key end

     0   :  { %s700_s21 = smov 0   ;;  %s702_s22 = smov 0   ;;  %s771_s0 = inlined_call_operand.vmem [shape: f32[2,8,256], index: 0, kind: input, shape index: {}]   ;;  %s772_s1 = inlined_call_operand.vmem [shape: f32[2,8,1], index: 1, kind: input, shape index: {}]   ;;  %s773_s2 = inlined_call_operand.vmem [shape: f32[2,1,256], index: 2, kind: input, shape index: {}]   ;;  %s774_s3 = inlined_call_operand.vmem [shape: f32[2,4,256], index: 3, kind: input, shape index: {}]   ;;  %s775_s4 = inlined_call_operand.vmem [shape: f32[8,4], index: 4, kind: input, shape index: {}]   ;;  %s776_s5 = inlined_call_operand.vmem [shape: f32[8,1], index: 5, kind: input, shape index: {}]   ;;  %s777_s6 = inlined_call_operand.vmem [shape: f32[2,8,256], index: 6, kind: output, shape index: {}]  }
   0x1   :  { %s704_s23 = smov 0   ;;  %s706_s24 = smov 0  }
   0x2   :  { %s708_s25 = smov 0  }
   0x3 LB: > { %s25_s26 = sadd.s32 1, %s654_s23  ;;  %s28_s27 = sadd.s32 1, %s658_s24  ;;  %s662_s25 = sphi %s708_s25, %s16_s25   ;;  %s658_s24 = sphi %s706_s24, %s781_s24   ;;  %s654_s23 = sphi %s704_s23, %s780_s23   ;;  %s650_s22 = sphi %s702_s22, %s779_s22   ;;  %s646_s21 = sphi %s700_s21, %s778_s21  }
   0x4   : > { %p26_p0 = scmp.ge.s32.totalorder %s25_s26, 2  ;;  %p564_p1 = scmp.ge.s32.totalorder %s662_s25, 1 }
   0x5   : > { %p269_p2 = scmp.lt.s32.totalorder %s662_s25, 5 }
   0x6   : > { %s783_s26 = smov (%p26_p0, %s25_s26), 0  ;;  %s785_s27 = smov (!%p26_p0, %s28_s27), %s658_s24 }
   0x7   : > { %p270_p3 = pnand %p564_p1, %p269_p2  ;;  %p30_p4 = scmp.ge.s32.totalorder %s785_s27, 2 }
   0x8   : > { %p324_p5 = scmp.lt.s32.totalorder (!%p270_p3), %s650_s22, 1  ;;  %p326_p6 = scmp.lt.s32.totalorder (!%p270_p3), %s646_s21, 1 }
   0x9   : > { %s787_s27 = smov (%p30_p4, %s785_s27), 0  ;;  %273 = sbr.rel (%p270_p3) target bundleno = 152 (0x98), region = 44 }
   0xe   : > { %v664_v0 = vmov 0   ;;  %s789_s22 = smov (!%p324_p5, %s650_s22), 1  ;;  %s791_s21 = smov (!%p326_p6, %s646_s21), 1  ;;  %vm399_vm0 = vcmask 1043456   ;;  %v387_v2 = vld [vmem:[%s775_s4] sm:$0xff]  ;;  %vm395_vm1 = vcmask 31744  }
   0xf   : > { %619 = vset.pattern.permute.xlu0 %v664_v0  ;;  %s567_s28 = sshll.u32 %s789_s22, 3  ;;  %s565_s29 = sshll.u32 %s789_s22, 1  ;;  %v389_v4 = vld [vmem:[%s776_s5] sm:$0xff] }
  0x10   : > { %s335_s8 = scalar_lea.vmem %s772_s1, %s567_s28  ;;  %s733_s9 = sadd.s32 %s565_s29, %s791_s21 }
  0x11   : > { %v379_v1 = vld [vmem:[%s335_s8] sm:$0xff]  ;;  %s570_s10 = sshll.u32 %s733_s9, 2  ;;  %s342_s20 = scalar_lea.vmem %s773_s2, %s733_s9 }
  0x12   : > { %383 = vperm.xlu0 %619, %v379_v1   ;;  %s350_s13 = scalar_lea.vmem %s774_s3, %s570_s10  ;;  %v359_v5 = vld [vmem:[%s342_s20] sm:$0x1]  ;;  %s566_s21 = sshll.u32 %s733_s9, 3 }
  0x13   : > { %v388_v3 = vld [vmem:[%s350_s13] sm:$0xf]  ;;  %v573_v6 = vmul.f32 -1.442695, %v359_v5  ;;  %s331_s29 = scalar_lea.vmem %s771_s0, %s566_s21  ;;  %s358_s8 = scalar_lea.vmem %s777_s6, %s566_s21 }
  0x14   : > { %574 = vmatpush.msk.msra.mxu0 %vm399_vm0, %v388_v3  ;;  %v380_v20 = vld [vmem:[%s331_s29] sm:$0xff] }
  0x15   : > { %575 = vmatmul.msk.f32.vlgmr.msra.gmra.mxu0 %vm395_vm1, %v387_v2  ;;  %620 = vpow2.f32 %v573_v6 }
  0x1a   : > { %392 = vperm.xlu0 %619, %v389_v4  }
  0x1b   : > { %v621_v7 = vpop.eup %620 }
  0x1c   : > { %v363_v8 = vadd.f32 1.0, %v621_v7 }
  0x1e   : > { %622 = vrcp.f32 %v363_v8  ;;  %vm369_vm2 = vweird.f32 %v363_v8  ;;  %v375_v13 = vand.u32 2147483648, %v363_v8  ;;  %v373_v15 = vand.u32 2147483647, %v363_v8 }
  0x20   : > { %v376_v17 = vor.u32 1.1754944e-38, %v375_v13  ;;  %vm374_vm5 = vcmp.eq.f32.partialorder %v373_v15, 8.507059e+37 }
  0x24   : > { %v623_v9 = vpop.eup %622 }
  0x25   : > { %v365_v10 = vmul.f32 %v623_v9, %v363_v8  ;;  %vm370_vm3 = vweird.f32 %v623_v9 }
  0x26   : > { %vm371_vm4 = vmor %vm369_vm2, %vm370_vm3 }
  0x27   : > { %v366_v11 = vsub.f32 1.0, %v365_v10 }
  0x29   : > { %v367_v12 = vmul.f32 %v623_v9, %v366_v11 }
  0x2b   : > { %v368_v14 = vadd.f32 %v623_v9, %v367_v12 }
  0x2d   : > { %v372_v18 = vsel %vm371_vm4, %v623_v9, %v368_v14 }
  0x2e   : > { %v377_v19 = vsel %vm374_vm5, %v376_v17, %v372_v18 }
  0x2f   : > { %v424_v22 = vperm.slane %v377_v19, 0 }
  0x84   : > { %v384_v16 = vpop.permute.xlu0 %383 }
  0x85   : > { %v386_v21 = vmul.f32 %v384_v16, %v380_v20 }
  0x87   : > { %v426_v25 = vmul.f32 %v424_v22, %v386_v21 }
  0x8c   : > { %v393_v23 = vpop.permute.xlu0 %392 }
  0x92   : > { %v420_v24 = vpop.f32.mrf.mxu0 }
  0x93   : > { %v421_v26 = vadd.f32 %v420_v24, %v393_v23 }
  0x95   : > { %v427_v27 = vadd.f32 %v426_v25, %v421_v26 }
  0x97   : > { %428 = vst [vmem:[%s358_s8] sm:$0xff] %v427_v27 }
  0x98 PF: > { %s16_s25 = sadd.s32 1, %s662_s25   ;;  %s778_s21 = smov %s654_s23 }
  0x99   : > { %p13_p7 = scmp.ge.s32.totalorder %s16_s25, 6   ;;  %s779_s22 = smov %s658_s24 }
  0x9a   : > { %s780_s23 = smov %s783_s26  ;;  %s781_s24 = smov %s787_s27 }
  0x9b   :  { %15 = sbr.rel (!%p13_p7) target bundleno = 3 (0x3), region = 83 }

</bundles_post_ra>
